<compile_context>
chip_gen: v7x
topology: tpu7x:2x2x1
jax: 0.10.0
libtpu: 0.0.40
codegen_flags: <defaults>
</compile_context>

<pallas_src>
import functools
import math

import jax
import jax.numpy as jnp
from jax.experimental import pallas as pl
from jax.experimental.pallas import tpu as pltpu

BN_EPS = 1e-5


# ============================ Pallas kernel ============================

def conv_block_kernel(width, bn_training, eps,
                      x_ref, w_ref, b_ref, p0_ref, p1_ref, o_ref):
    """Fused ZeroPad2d((1,1,0,0)) + Conv2d(k=(1,3)) + ReLU + BatchNorm2d.

    x_ref:  (Cin, N)      activations, N = B*H*W with W fastest (lane-dense)
    w_ref:  (Cout, 3*Cin) packed conv weights, column k = tap*Cin + cin
                          (tap 0 -> x[w-1], tap 1 -> x[w], tap 2 -> x[w+1])
    b_ref:  (Cout, 1)     conv bias
    p0_ref: (Cout, 1)     eval: gamma / sqrt(running_var + eps)   train: gamma
    p1_ref: (Cout, 1)     eval: beta - running_mean * p0          train: beta
    o_ref:  (Cout, N)
    """
    x = x_ref[...]                                   # (Cin, N) f32
    cin, n = x.shape
    zero_col = jnp.zeros((cin, 1), jnp.float32)

    # Neighbouring-lane copies.  The flattened N axis packs rows of length
    # `width`, so a 1-lane shift bleeds across row boundaries exactly where
    # the ZeroPad2d((1,1,0,0)) zeros belong -> mask those positions to zero.
    wpos = jax.lax.broadcasted_iota(jnp.int32, (cin, n), 1) % width
    x_m1 = jnp.concatenate([zero_col, x[:, : n - 1]], axis=1)   # value at w-1
    x_p1 = jnp.concatenate([x[:, 1:], zero_col], axis=1)        # value at w+1
    x_m1 = jnp.where(wpos == 0, 0.0, x_m1)                      # left zero-pad
    x_p1 = jnp.where(wpos == width - 1, 0.0, x_p1)              # right zero-pad

    # im2col slab: one MXU contraction over (tap, cin) = 3*Cin.
    cols = jnp.concatenate([x_m1, x, x_p1], axis=0)             # (3*Cin, N)
    y = jnp.dot(w_ref[...], cols,
                preferred_element_type=jnp.float32)             # (Cout, N)

    y = jnp.maximum(y + b_ref[...], 0.0)                        # bias + ReLU

    if bn_training:
        # Training-mode BN: per-channel batch mean / biased variance of the
        # ReLU output (lane reduction), normalize with gamma / beta.
        mean = jnp.mean(y, axis=1, keepdims=True)               # (Cout, 1)
        var = jnp.mean(jnp.square(y - mean), axis=1, keepdims=True)
        inv = p0_ref[...] * jax.lax.rsqrt(var + eps)
        o_ref[...] = (y - mean) * inv + p1_ref[...]
    else:
        # Eval-mode BN: running stats pre-folded to a single FMA.
        o_ref[...] = y * p0_ref[...] + p1_ref[...]


# ============================ wrapper ============================

@functools.partial(jax.jit, static_argnames=("training", "eps"))
def conv_block(x, w, b, gamma, beta, running_mean, running_var,
               *, training=False, eps=BN_EPS):
    """x: [B, Cin, H, W], w: [Cout, Cin, 1, 3] (PyTorch OIHW) -> [B, Cout, H, W]."""
    B, Cin, H, W = x.shape
    Cout = w.shape[0]
    N = B * H * W

    # One-time layout plumbing: channels on sublanes, B*H*W on lanes.
    x2d = jnp.transpose(x, (1, 0, 2, 3)).reshape(Cin, N)

    # Pack taps into the contraction dim: w_packed[o, tap*Cin + cin] = w[o, cin, 0, tap]
    w_packed = jnp.transpose(w[:, :, 0, :], (0, 2, 1)).reshape(Cout, 3 * Cin)

    if training:
        p0, p1 = gamma, beta
    else:
        # Fold eval-mode BatchNorm (applied after ReLU, as in the nn.Sequential).
        p0 = gamma / jnp.sqrt(running_var + eps)
        p1 = beta - running_mean * p0

    vmem = pl.BlockSpec(memory_space=pltpu.MemorySpace.VMEM)
    out2d = pl.pallas_call(
        functools.partial(conv_block_kernel, W, training, eps),
        out_shape=jax.ShapeDtypeStruct((Cout, N), jnp.float32),
        in_specs=[vmem, vmem, vmem, vmem, vmem],
        out_specs=vmem,
    )(x2d, w_packed, b[:, None], p0[:, None], p1[:, None])

    # Back to PyTorch NCHW.
    return jnp.transpose(out2d.reshape(Cout, B, H, W), (1, 0, 2, 3))


# ============================ pure-JAX reference ============================

def conv_block_reference(x, w, b, gamma, beta, running_mean, running_var,
                         *, training=False, eps=BN_EPS):
    y = jax.lax.conv_general_dilated(
        x, w, window_strides=(1, 1), padding=((0, 0), (1, 1)),
        dimension_numbers=("NCHW", "OIHW", "NCHW"),
        precision=jax.lax.Precision.HIGHEST)
    y = jnp.maximum(y + b[None, :, None, None], 0.0)
    if training:
        mean = jnp.mean(y, axis=(0, 2, 3))
        var = jnp.mean(jnp.square(y - mean[None, :, None, None]), axis=(0, 2, 3))
    else:
        mean, var = running_mean, running_var
    inv = gamma / jnp.sqrt(var + eps)
    return (y - mean[None, :, None, None]) * inv[None, :, None, None] \
        + beta[None, :, None, None]


# ============================ main ============================

if __name__ == "__main__":
    key = jax.random.PRNGKey(0)
    B, Cin, H, W, Cout = 2, 4, 16, 16, 8           # N = B*H*W = 512 (lane-dense)
    ks = jax.random.split(key, 7)

    bound = 1.0 / math.sqrt(Cin * 3)
    x = jax.random.normal(ks[0], (B, Cin, H, W), jnp.float32)
    w = jax.random.uniform(ks[1], (Cout, Cin, 1, 3), jnp.float32, -bound, bound)
    b = jax.random.uniform(ks[2], (Cout,), jnp.float32, -bound, bound)
    gamma = 1.0 + 0.1 * jax.random.normal(ks[3], (Cout,), jnp.float32)
    beta = 0.1 * jax.random.normal(ks[4], (Cout,), jnp.float32)
    running_mean = 0.1 * jax.random.normal(ks[5], (Cout,), jnp.float32)
    running_var = jnp.abs(1.0 + 0.1 * jax.random.normal(ks[6], (Cout,), jnp.float32))

    # Eval-mode forward (running stats).
    y_eval = conv_block(x, w, b, gamma, beta, running_mean, running_var,
                        training=False)
    jax.block_until_ready(y_eval)
    assert y_eval.shape == (B, Cout, H, W)
    ref_eval = conv_block_reference(x, w, b, gamma, beta, running_mean,
                                    running_var, training=False)
    err_eval = float(jnp.max(jnp.abs(y_eval - ref_eval)))
    assert err_eval < 2e-2, f"eval-mode mismatch, max abs err = {err_eval}"

    # Training-mode forward (batch statistics, PyTorch default module state).
    y_train = conv_block(x, w, b, gamma, beta, running_mean, running_var,
                         training=True)
    jax.block_until_ready(y_train)
    ref_train = conv_block_reference(x, w, b, gamma, beta, running_mean,
                                     running_var, training=True)
    err_train = float(jnp.max(jnp.abs(y_train - ref_train)))
    assert err_train < 2e-2, f"train-mode mismatch, max abs err = {err_train}"

    print("KERNEL_OK")
</pallas_src>

<mosaic_0001>
module attributes {stable_mosaic.version = 11 : i64} {
  func.func @conv_block_kernel(%arg0: memref<4x512xf32, #tpu.memory_space<vmem>>, %arg1: memref<8x12xf32, #tpu.memory_space<vmem>>, %arg2: memref<8x1xf32, #tpu.memory_space<vmem>>, %arg3: memref<8x1xf32, #tpu.memory_space<vmem>>, %arg4: memref<8x1xf32, #tpu.memory_space<vmem>>, %arg5: memref<8x512xf32, #tpu.memory_space<vmem>>) attributes {dimension_semantics = [], scalar_prefetch = 0 : i64, scratch_operands = 0 : i64, tpu.core_type = #tpu.core_type<tc>} {
    %c0 = arith.constant 0 : index
    %c0_0 = arith.constant 0 : index
    %0 = vector.load %arg0[%c0, %c0_0] : memref<4x512xf32, #tpu.memory_space<vmem>>, vector<4x512xf32>
    %cst = arith.constant 0.000000e+00 : f32
    %1 = vector.broadcast %cst : f32 to vector<4x1xf32>
    %2 = tpu.iota {dimensions = array<i32: 1>} : vector<4x512xi32>
    %c16_i32 = arith.constant 16 : i32
    %c0_i32 = arith.constant 0 : i32
    %3 = arith.cmpi eq, %c16_i32, %c0_i32 : i32
    %c1_i32 = arith.constant 1 : i32
    %4 = arith.select %3, %c1_i32, %c16_i32 : i32
    %5 = vector.broadcast %4 : i32 to vector<4x512xi32>
    %6 = arith.remsi %2, %5 : vector<4x512xi32>
    %c0_i32_1 = arith.constant 0 : i32
    %7 = vector.broadcast %c0_i32_1 : i32 to vector<4x512xi32>
    %8 = arith.cmpi ne, %6, %7 : vector<4x512xi32>
    %c0_i32_2 = arith.constant 0 : i32
    %9 = vector.broadcast %c0_i32_2 : i32 to vector<4x512xi32>
    %10 = arith.cmpi slt, %6, %9 : vector<4x512xi32>
    %c0_i32_3 = arith.constant 0 : i32
    %11 = arith.cmpi slt, %4, %c0_i32_3 : i32
    %12 = vector.broadcast %11 : i1 to vector<4x512xi1>
    %13 = vector.broadcast %12 : vector<4x512xi1> to vector<4x512xi1>
    %14 = arith.xori %10, %13 : vector<4x512xi1>
    %15 = arith.andi %14, %8 : vector<4x512xi1>
    %16 = vector.broadcast %4 : i32 to vector<4x512xi32>
    %17 = arith.addi %6, %16 : vector<4x512xi32>
    %18 = arith.select %15, %17, %6 : vector<4x512xi1>, vector<4x512xi32>
    %19 = vector.extract_strided_slice %0 {offsets = [0, 0], sizes = [4, 511], strides = [1, 1]} : vector<4x512xf32> to vector<4x511xf32>
    %20 = tpu.concatenate %1, %19 in 1 : vector<4x1xf32>, vector<4x511xf32> -> vector<4x512xf32>
    %21 = vector.extract_strided_slice %0 {offsets = [0, 1], sizes = [4, 511], strides = [1, 1]} : vector<4x512xf32> to vector<4x511xf32>
    %22 = tpu.concatenate %21, %1 in 1 : vector<4x511xf32>, vector<4x1xf32> -> vector<4x512xf32>
    %c0_i32_4 = arith.constant 0 : i32
    %23 = vector.broadcast %c0_i32_4 : i32 to vector<4x512xi32>
    %24 = arith.cmpi eq, %18, %23 : vector<4x512xi32>
    %cst_5 = arith.constant 0.000000e+00 : f32
    %25 = vector.broadcast %cst_5 : f32 to vector<4x512xf32>
    %26 = arith.select %24, %25, %20 : vector<4x512xi1>, vector<4x512xf32>
    %c15_i32 = arith.constant 15 : i32
    %27 = vector.broadcast %c15_i32 : i32 to vector<4x512xi32>
    %28 = arith.cmpi eq, %18, %27 : vector<4x512xi32>
    %cst_6 = arith.constant 0.000000e+00 : f32
    %29 = vector.broadcast %cst_6 : f32 to vector<4x512xf32>
    %30 = arith.select %28, %29, %22 : vector<4x512xi1>, vector<4x512xf32>
    %31 = tpu.concatenate %26, %0, %30 in 0 : vector<4x512xf32>, vector<4x512xf32>, vector<4x512xf32> -> vector<12x512xf32>
    %c0_7 = arith.constant 0 : index
    %c0_8 = arith.constant 0 : index
    %32 = vector.load %arg1[%c0_7, %c0_8] : memref<8x12xf32, #tpu.memory_space<vmem>>, vector<8x12xf32>
    %cst_9 = arith.constant dense<0.000000e+00> : vector<8x512xf32>
    %33 = tpu.matmul %32, %31, %cst_9 {dimension_numbers = #tpu.dot_dimension_numbers<[1], [0], [0], [1], [0, 0, 1, 1], [], []>} : vector<8x12xf32>, vector<12x512xf32>, vector<8x512xf32> -> vector<8x512xf32>
    %c0_10 = arith.constant 0 : index
    %c0_11 = arith.constant 0 : index
    %34 = vector.load %arg2[%c0_10, %c0_11] : memref<8x1xf32, #tpu.memory_space<vmem>>, vector<8x1xf32>
    %35 = vector.broadcast %34 : vector<8x1xf32> to vector<8x512xf32>
    %36 = arith.addf %33, %35 : vector<8x512xf32>
    %cst_12 = arith.constant 0.000000e+00 : f32
    %37 = vector.broadcast %cst_12 : f32 to vector<8x512xf32>
    %38 = arith.maximumf %36, %37 : vector<8x512xf32>
    %c0_13 = arith.constant 0 : index
    %c0_14 = arith.constant 0 : index
    %39 = vector.load %arg3[%c0_13, %c0_14] : memref<8x1xf32, #tpu.memory_space<vmem>>, vector<8x1xf32>
    %40 = vector.broadcast %39 : vector<8x1xf32> to vector<8x512xf32>
    %41 = arith.mulf %38, %40 : vector<8x512xf32>
    %c0_15 = arith.constant 0 : index
    %c0_16 = arith.constant 0 : index
    %42 = vector.load %arg4[%c0_15, %c0_16] : memref<8x1xf32, #tpu.memory_space<vmem>>, vector<8x1xf32>
    %43 = vector.broadcast %42 : vector<8x1xf32> to vector<8x512xf32>
    %44 = arith.addf %41, %43 : vector<8x512xf32>
    %c0_17 = arith.constant 0 : index
    %c0_18 = arith.constant 0 : index
    %45 = vector.load %arg5[%c0_17, %c0_18] : memref<8x512xf32, #tpu.memory_space<vmem>>, vector<8x512xf32>
    tpu.vector_store %arg5[%c0_17, %c0_18], %44 {strides = array<i32>} : memref<8x512xf32, #tpu.memory_space<vmem>>, vector<8x512xf32>,
    return
  }
}

</mosaic_0001>

<bundles_post_ra>
// kernel: conv_block.1
= control target key start
LH: loop header
LB: loop body
LE: loop exit
PB: predicated region body
PF: predicated region fallthrough
CT: control target
= control target key end

     0   :  { %s384_s22 = smov 127   ;;  %s385_s23 = smov 1   ;;  %v386_v8 = vmov 0.0   ;;  %v387_v9 = vmov 0   ;;  %v22_v13 = vlaneseq  ;;  %vm87_vm0 = vcmask 7168   ;;  %s540_s0 = inlined_call_operand.vmem [shape: f32[4,512], index: 0, kind: input, shape index: {}]   ;;  %s541_s2 = inlined_call_operand.vmem [shape: f32[8,1], index: 2, kind: input, shape index: {}]   ;;  %s542_s3 = inlined_call_operand.vmem [shape: f32[8,1], index: 3, kind: input, shape index: {}]   ;;  %s543_s4 = inlined_call_operand.vmem [shape: f32[8,1], index: 4, kind: input, shape index: {}]   ;;  %s544_s1 = inlined_call_operand.vmem [shape: f32[8,12], index: 1, kind: input, shape index: {}]   ;;  %s545_s5 = inlined_call_operand.vmem [shape: f32[8,512], index: 5, kind: output, shape index: {}]  }
   0x1   :  { %v422_v0 = vld [vmem:[%s540_s0] sm:$0xff]  ;;  %v427_v1 = vld [vmem:[%s540_s0 + $0x8] sm:$0xff]  ;;  %225 = vmatprep.mubr.f32.mxu0 %v386_v8  ;;  %296 = vmatprep.mubr.f32.mxu1 %v386_v8  ;;  %vm104_vm1 = vcmask 1039360   ;;  %vm133_vm2 = vcmask 1043456   ;;  %vm388_vm9 = vmmov 1   ;;  %vm145_vm13 = vcmask 97280  }
   0x2   :  { %v77_v2 = vcombine.high %v422_v0, %v422_v0  ;;  %v78_v3 = vcombine.high %v427_v1, %v427_v1  ;;  %378 = vset.pattern.permute.xlu0 %v387_v9  ;;  %379 = vset.pattern.permute.xlu1 %v387_v9  ;;  %v139_v10 = vld [vmem:[%s541_s2] sm:$0xff]  ;;  %v23_v14 = vand.u32 127, %v22_v13  ;;  %v129_v31 = vcombine.low %v422_v0, %v422_v0  ;;  %vm486_vm10 = vmpackc.low %vm133_vm2, %vm388_vm9 }
   0x3   :  { %v307_v11 = vld [vmem:[%s542_s3] sm:$0xff]  ;;  %v130_v33 = vcombine.low %v427_v1, %v427_v1 }
   0x4   :  { %v368_v4 = vpack.i.bf16 %v427_v1, %v77_v2  ;;  %v358_v5 = vpack.i.bf16 %v77_v2, %v422_v0  ;;  %v373_v6 = vpack.i.bf16 %v422_v0, %v78_v3  ;;  %v363_v7 = vpack.i.bf16 %v78_v3, %v427_v1  ;;  %v317_v12 = vld [vmem:[%s543_s4] sm:$0xff] }
   0x5   :  { %v24_v15 = vadd.s32 128, %v23_v14  ;;  %v26_v16 = vadd.s32 384, %v23_v14  ;;  %v31_v17 = vand.u32 15, %v23_v14  ;;  %v25_v19 = vadd.s32 256, %v23_v14 }
   0x6   :  { %369 = vrot.lane.b32.xlu1 %v368_v4, %s384_s22  ;;  %359 = vrot.lane.b32.xlu0 %v358_v5, %s385_s23 }
   0x7   :  { %v38_v18 = vand.u32 15, %v24_v15  ;;  %v52_v20 = vand.u32 15, %v26_v16  ;;  %vm446_vm3 = vcmp.eq.s32.totalorder %v31_v17, 0  ;;  %vm458_vm6 = vcmp.eq.s32.totalorder %v31_v17, 15 }
   0x8   :  { %v45_v32 = vand.u32 15, %v25_v19 }
   0x9   :  { %vm450_vm4 = vcmp.eq.s32.totalorder %v38_v18, 0  ;;  %vm454_vm5 = vcmp.eq.s32.totalorder %v38_v18, 15  ;;  %vm469_vm7 = vcmp.eq.s32.totalorder %v52_v20, 0  ;;  %vm479_vm8 = vcmp.eq.s32.totalorder %v52_v20, 15 }
   0xa   :  { %374 = vrot.lane.b32.xlu1 %v373_v6, %s384_s22  ;;  %364 = vrot.lane.b32.xlu0 %v363_v7, %s385_s23  ;;  %vm491_vm11 = vcmp.eq.s32.totalorder %v45_v32, 0  ;;  %vm495_vm12 = vcmp.eq.s32.totalorder %v45_v32, 15  ;;  %v138_v6 = vld [vmem:[%s544_s1] sm:$0xff] }
   0xe   :  { %142 = vperm.xlu0 %378, %v139_v10   ;;  %310 = vperm.xlu1 %379, %v307_v11  }
  0x12   :  { %320 = vperm.xlu1 %379, %v317_v12  }
  0x78   :  { %v370_v21 = vpop.permute.xlu1 %369  ;;  %v360_v23 = vpop.permute.xlu0 %359 }
  0x79   :  { %v372_v26 = vunpack.i.h.bf16 %v370_v21  ;;  %v371_v27 = vunpack.i.l.bf16 %v370_v21  ;;  %v362_v28 = vunpack.i.h.bf16 %v360_v23  ;;  %v361_v29 = vunpack.i.l.bf16 %v360_v23 }
  0x7b   :  { %v95_v34 = vsel %vm87_vm0, 0.0, %v361_v29  ;;  %v88_v35 = vsel %vm87_vm0, %v361_v29, %v362_v28  ;;  %v106_v36 = vsel %vm104_vm1, %v371_v27, %v372_v26 }
  0x7c   :  { %v117_v38 = vsel %vm446_vm3, 0.0, %v95_v34  ;;  %v375_v39 = vpop.permute.xlu1 %374  ;;  %v365_v40 = vpop.permute.xlu0 %364  ;;  %v118_v41 = vsel %vm450_vm4, 0.0, %v88_v35  ;;  %v126_v42 = vsel %vm454_vm5, 0.0, %v106_v36 }
  0x7d   :  { %v377_v44 = vunpack.i.h.bf16 %v375_v39  ;;  %v376_v45 = vunpack.i.l.bf16 %v375_v39  ;;  %v367_v46 = vunpack.i.h.bf16 %v365_v40  ;;  %v366_v47 = vunpack.i.l.bf16 %v365_v40 }
  0x7e   :  { %v135_v48 = vsel %vm133_vm2, %v118_v41, %v422_v0  ;;  %v134_v50 = vsel %vm133_vm2, %v117_v38, %v129_v31 }
  0x7f   :  { %v89_v53 = vsel %vm87_vm0, %v362_v28, %v366_v47  ;;  %v341_v54 = vpack.c.bf16 %v126_v42, %v135_v48  ;;  %v105_v55 = vsel %vm104_vm1, %v377_v44, %v371_v27  ;;  %v90_v56 = vsel %vm87_vm0, %v366_v47, %v367_v46 }
  0x80   :  { %v125_v57 = vsel %vm458_vm6, 0.0, %v105_v55  ;;  %v112_v58 = vsel %vm104_vm1, %v376_v45, 0.0  ;;  %v120_v59 = vsel %vm469_vm7, 0.0, %v90_v56  ;;  %v107_v60 = vsel %vm104_vm1, %v372_v26, %v376_v45 }
  0x81   :  { %343 = vmatprep.subr.msk.bf16.mxu0 %vm486_vm10, %v341_v54  ;;  %v344_v61 = vpack.c.bf16 %v125_v57, %v134_v50  ;;  %v128_v62 = vsel %vm479_vm8, 0.0, %v112_v58  ;;  %v137_v63 = vsel %vm133_vm2, %v120_v59, %v427_v1  ;;  %v119_v0 = vsel %vm491_vm11, 0.0, %v89_v53 }
  0x82   :  { %v347_v2 = vpack.c.bf16 %v128_v62, %v137_v63  ;;  %v127_v3 = vsel %vm495_vm12, 0.0, %v107_v60  ;;  %v136_v4 = vsel %vm133_vm2, %v119_v0, %v130_v33 }
  0x83   :  { %346 = vmatpush1.bf16.msk.msra.mxu0 %vm486_vm10, %v344_v61  ;;  %v350_v5 = vpack.c.bf16 %v127_v3, %v136_v4 }
  0x84   :  { %349 = vmatprep.subr.msk.bf16.mxu1 %vm486_vm10, %v347_v2 }
  0x85   :  { %352 = vmatpush1.bf16.msk.msra.mxu1 %vm486_vm10, %v350_v5 }
  0x86   :  { %337 = vmatmul.mubr.msk.f32.vlgmr.msra.gmra.mrb[0].mxu0 %vm145_vm13, %v138_v6 }
  0x88   :  { %340 = vmatmul.mubr.msk.f32.vlgmr.msra.gmra.mrb[0].mxu1 %vm145_vm13, %v138_v6 }
  0x8d   :  { %v143_v1 = vpop.permute.xlu0 %142  ;;  %v311_v7 = vpop.permute.xlu1 %310 }
  0x91   :  { %v321_v18 = vpop.permute.xlu1 %320 }
 0x159   :  { %v227_v8 = vpop.f32.mrb[0].mxu0 }
 0x15a   :  { %v228_v9 = vadd.f32 %v227_v8, %v143_v1  ;;  %v229_v10 = vpop.f32.mrb[1].mxu0 }
 0x15b   :  { %v230_v11 = vadd.f32 %v229_v10, %v143_v1  ;;  %v298_v12 = vpop.f32.mrb[0].mxu1 }
 0x15c   :  { %v303_v13 = vmax.f32 %v228_v9, 0.0  ;;  %v299_v14 = vadd.f32 %v298_v12, %v143_v1  ;;  %v300_v15 = vpop.f32.mrb[1].mxu1 }
 0x15d   :  { %v304_v16 = vmax.f32 %v230_v11, 0.0  ;;  %v301_v17 = vadd.f32 %v300_v15, %v143_v1 }
 0x15e   :  { %v305_v19 = vmax.f32 %v299_v14, 0.0  ;;  %v313_v20 = vmul.f32 %v311_v7, %v303_v13 }
 0x15f   :  { %v314_v21 = vmul.f32 %v311_v7, %v304_v16  ;;  %v306_v22 = vmax.f32 %v301_v17, 0.0 }
 0x160   :  { %v315_v23 = vmul.f32 %v311_v7, %v305_v19  ;;  %v323_v24 = vadd.f32 %v321_v18, %v313_v20 }
 0x161   :  { %v316_v25 = vmul.f32 %v311_v7, %v306_v22  ;;  %v324_v26 = vadd.f32 %v321_v18, %v314_v21 }
 0x162   :  { %v325_v27 = vadd.f32 %v321_v18, %v315_v23  ;;  %327 = vst [vmem:[%s545_s5] sm:$0xff] %v323_v24 }
 0x163   :  { %v326_v28 = vadd.f32 %v321_v18, %v316_v25  ;;  %328 = vst [vmem:[%s545_s5 + $0x8] sm:$0xff] %v324_v26 }
 0x164   :  { %329 = vst [vmem:[%s545_s5 + $0x10] sm:$0xff] %v325_v27 }
 0x165   :  { %330 = vst [vmem:[%s545_s5 + $0x18] sm:$0xff] %v326_v28 }

</bundles_post_ra>
